<compile_context>
chip_gen: v5e
topology: v5e:2x2
jax: 0.10.0
libtpu: 0.0.40
codegen_flags: <defaults>
</compile_context>

<pallas_src>
import functools

import jax
import jax.numpy as jnp
from jax import lax
from jax.experimental import pallas as pl
from jax.experimental.pallas import tpu as pltpu

# ----- constants matching the PyTorch module defaults ------------------------
MS_ALPHA = 1.0
MS_BETA = 60.0
MS_BASE = 0.5
MINER_MARGIN = 0.2      # TripletMarginMiner(margin=0.2, type_of_triplets='all')


def _tpu_vmem_capacity_bytes():
    """Physical VMEM per TensorCore; conservative 64 MiB fallback."""
    try:
        info = pltpu.get_tpu_info()
        cap = int(getattr(info, "vmem_capacity_bytes", 0) or 0)
        if cap > 0:
            return cap
    except Exception:
        pass
    return 64 * 1024 * 1024


_VMEM_CAP = _tpu_vmem_capacity_bytes()
# ~25% headroom for double-buffering + compiler scratch:
#   v5e/v6e (128 MiB physical) -> 96 MiB ; v7x (64 MiB physical) -> 48 MiB
_VMEM_LIMIT = max((_VMEM_CAP * 3) // 4, 32 * 1024 * 1024)
_SMALL_VMEM = _VMEM_CAP <= 64 * 1024 * 1024          # v7x-class TensorCore


def _pick_block(dim, target, align):
    """Largest tile <= target, `align`-aligned, dividing `dim`; else full dim
    (a full-extent block is always legal)."""
    if dim <= target:
        return dim
    b = (target // align) * align
    while b >= align:
        if dim % b == 0:
            return b
        b -= align
    return dim


# ----- kernel 1: stand-in encoder (tiled dense + tanh [+ fused L2 norm]) -----
def encoder_kernel(x_ref, w_ref, b_ref, o_ref, acc_ref, *, normalize):
    k = pl.program_id(2)

    @pl.when(k == 0)
    def _():
        acc_ref[...] = jnp.zeros_like(acc_ref)

    # autocast-equivalent: bf16 MXU operands with f32 accumulation.  x is cast
    # in-kernel so the wrapper never materializes a bf16 copy in HBM.
    acc_ref[...] += jnp.dot(x_ref[...].astype(jnp.bfloat16), w_ref[...],
                            preferred_element_type=jnp.float32)

    @pl.when(k == pl.num_programs(2) - 1)
    def _():
        h = jnp.tanh(acc_ref[...] + b_ref[...])          # f32 epilogue
        if normalize:
            # fused F.normalize (eps=1e-12); valid because this output block
            # spans the full feature dim (bn == H).  rsqrt -> EUP slot.
            h = h * lax.rsqrt(
                jnp.maximum(jnp.sum(h * h, axis=-1, keepdims=True), 1e-24))
        o_ref[...] = h


def encode(x2d, w_bf16, b, *, normalize=False, bm=512, bn=256, bk=256):
    """x2d: (R, Din) f32 -> tanh(x2d @ w + b) [optionally L2-normalized]: (R, H) f32.
    Returns (embeddings, was_normalized)."""
    R, Din = x2d.shape
    H = w_bf16.shape[1]
    bm = _pick_block(R, bm, 16)     # 16-aligned: matches bf16 (16,128) packing
    bn = _pick_block(H, bn, 128)
    bk = _pick_block(Din, bk, 128)
    do_norm = bool(normalize) and (bn == H)   # need the full row to normalize
    b2 = b.reshape(1, H).astype(jnp.float32)

    grid = (R // bm, H // bn, Din // bk)
    cost = pl.CostEstimate(
        flops=2 * R * Din * H,
        transcendentals=2 * R * H,
        bytes_accessed=4 * R * Din + 2 * Din * H + 4 * H + 4 * R * H)

    out = pl.pallas_call(
        functools.partial(encoder_kernel, normalize=do_norm),
        out_shape=jax.ShapeDtypeStruct((R, H), jnp.float32),
        grid_spec=pltpu.PrefetchScalarGridSpec(
            num_scalar_prefetch=0,
            grid=grid,
            in_specs=[pl.BlockSpec((bm, bk), lambda i, j, k: (i, k)),
                      pl.BlockSpec((bk, bn), lambda i, j, k: (k, j)),
                      pl.BlockSpec((1, bn), lambda i, j, k: (0, j))],
            out_specs=pl.BlockSpec((bm, bn), lambda i, j, k: (i, j)),
            scratch_shapes=[pltpu.VMEM((bm, bn), jnp.float32)]),
        compiler_params=pltpu.CompilerParams(
            dimension_semantics=("parallel", "parallel", "arbitrary"),
            vmem_limit_bytes=_VMEM_LIMIT),
        cost_estimate=cost,
    )(x2d.astype(jnp.float32), w_bf16, b2)
    return out, do_norm


# ----- kernel 2: miner + MultiSimilarityLoss (row-blocked over anchors) -------
def ms_metric_kernel(anc_ref, embT_ref, lab_row_ref, lab_col_ref, loss_ref,
                     *, precision):
    bm = anc_ref.shape[0]
    M = embT_ref.shape[1]
    inf = jnp.float32(jnp.inf)

    # cosine similarity: both operands are already L2-normalized; plain NN
    # matmul (bm,H)@(H,M) on the MXU with f32 accumulation and explicit
    # precision (MS_BETA=60 amplifies rounding of sim inside exp()).
    sim = jnp.dot(anc_ref[...], embT_ref[...],
                  preferred_element_type=jnp.float32,
                  precision=precision)                               # (bm, M)

    lab_r = lab_row_ref[...]                                         # (bm, 1)
    lab_c = lab_col_ref[...]                                         # (1, M)
    row0 = pl.program_id(0) * bm
    rows = row0 + lax.broadcasted_iota(jnp.int32, (bm, 1), 0)
    cols = lax.broadcasted_iota(jnp.int32, (1, M), 1)
    not_self = rows != cols
    same = (lab_r == lab_c) & not_self        # candidate (anchor, positive)
    diff = lab_r != lab_c                     # candidate (anchor, negative)

    # ---- TripletMarginMiner(margin, 'all') in similarity space -------------
    # d = sqrt(2 - 2*sim) is monotone decreasing in sim, so the per-element
    # distance comparisons collapse to comparing sim against per-row
    # thresholds; only (bm,1) sqrts are needed (no (bm,M) dist temporary).
    max_neg_sim = jnp.max(jnp.where(diff, sim, -inf), axis=1, keepdims=True)
    min_pos_sim = jnp.min(jnp.where(same, sim, inf), axis=1, keepdims=True)
    min_neg_d = jnp.sqrt(jnp.maximum(2.0 - 2.0 * max_neg_sim, 0.0))   # (bm,1)
    max_pos_d = jnp.sqrt(jnp.maximum(2.0 - 2.0 * min_pos_sim, 0.0))   # (bm,1)

    # (a,p) kept iff d(a,p) >= min_n d(a,n) - margin   (false if no negatives)
    tp = min_neg_d - MINER_MARGIN
    pos_thr = jnp.where(tp <= 0.0, inf, 1.0 - 0.5 * tp * tp)
    # (a,n) kept iff d(a,n) <= max_p d(a,p) + margin   (false if no positives)
    tn = max_pos_d + MINER_MARGIN
    neg_thr = jnp.where(min_pos_sim == inf, inf, 1.0 - 0.5 * tn * tn)

    pos_mask = same & (sim <= pos_thr)
    neg_mask = diff & (sim >= neg_thr)

    # ---- MultiSimilarityLoss(alpha=1, beta=60, base=0.5), per anchor -------
    #  (1/a) log(1 + sum_p exp(a*(base - s))) + (1/b) log(1 + sum_n exp(b*(s - base)))
    # rows with empty masks contribute 0 (lmu.logsumexp(add_one=True) + fill 0).
    def log1p_sumexp(vals, mask):
        m = jnp.maximum(
            jnp.max(jnp.where(mask, vals, -inf), axis=1, keepdims=True), 0.0)
        s = jnp.sum(jnp.where(mask, jnp.exp(vals - m), 0.0),
                    axis=1, keepdims=True) + jnp.exp(-m)
        return m + jnp.log(s)

    pos_loss = log1p_sumexp(MS_ALPHA * (MS_BASE - sim), pos_mask) / MS_ALPHA
    neg_loss = log1p_sumexp(MS_BETA * (sim - MS_BASE), neg_mask) / MS_BETA
    # TODO(synk): v5e micro-opt (lane-dense (1,bm) loss layout) skipped to keep
    #             the known-good (bm,1) writeback; output is tiny.
    loss_ref[...] = pos_loss + neg_loss                               # (bm, 1)


def sap_metric_loss(emb_n, labels, *, bm=None):
    """emb_n: (M, H) L2-normalized f32 embeddings, labels: (M,) int -> scalar."""
    M, H = emb_n.shape
    if bm is None:
        # v7x (64 MiB VMEM): bm=128 halves live (bm,M) temporaries; v5e/v6e: 256.
        bm = 128 if _SMALL_VMEM else 256
    if M >= 16:
        bm = min(bm, M // 2)          # >=2 anchor blocks so megacore can split
    bm = _pick_block(M, bm, 8)

    emb_n = emb_n.astype(jnp.float32)
    emb_nT = emb_n.T                  # one-time (H, M) transpose, amortized
    lab_row = labels.reshape(M, 1).astype(jnp.int32)
    lab_col = labels.reshape(1, M).astype(jnp.int32)

    cost = pl.CostEstimate(
        flops=2 * M * M * H + 12 * M * M,
        transcendentals=2 * M * M,
        bytes_accessed=4 * (2 * M * H) + 4 * 3 * M)

    def build(single_buffer_invariant, precision):
        kw = ({"pipeline_mode": pl.Buffered(1)}
              if single_buffer_invariant else {})
        return pl.pallas_call(
            functools.partial(ms_metric_kernel, precision=precision),
            out_shape=jax.ShapeDtypeStruct((M, 1), jnp.float32),
            grid_spec=pltpu.PrefetchScalarGridSpec(
                num_scalar_prefetch=0,
                grid=(M // bm,),
                in_specs=[
                    pl.BlockSpec((bm, H), lambda i: (i, 0)),        # anchors
                    pl.BlockSpec((H, M), lambda i: (0, 0), **kw),   # all embs^T
                    pl.BlockSpec((bm, 1), lambda i: (i, 0)),        # anchor lab
                    pl.BlockSpec((1, M), lambda i: (0, 0), **kw),   # all labels
                ],
                out_specs=pl.BlockSpec((bm, 1), lambda i: (i, 0))),
            compiler_params=pltpu.CompilerParams(
                dimension_semantics=("parallel",),
                vmem_limit_bytes=_VMEM_LIMIT),
            cost_estimate=cost,
        )

    try:
        per_anchor = build(True, lax.Precision.HIGHEST)(
            emb_n, emb_nT, lab_row, lab_col)
    except Exception:
        # conservative fallback: double-buffered invariants, default precision
        per_anchor = build(False, None)(emb_n, emb_nT, lab_row, lab_col)

    # MultiSimilarityLoss emits per-anchor 'element' losses (0 for anchors with
    # no mined pairs); the default MeanReducer averages over ALL anchors.
    return jnp.mean(per_anchor)


# ----- module-equivalent wrapper ----------------------------------------------
class SapMetricLearningPallas:
    """JAX/Pallas port of Sap_Metric_Learning.forward (loss='ms_loss',
    use_miner=True, miner_margin=0.2, type_of_triplets='all')."""

    def __init__(self, enc_w, enc_b, agg_mode="cls"):
        # TODO(synk): the HF transformer encoder passed to the torch module is
        #             external; stood in by one dense+tanh layer.
        self.enc_w_bf16 = enc_w.astype(jnp.bfloat16)   # one-time weight cast
        self.enc_b = enc_b
        self.agg_mode = agg_mode
        # NOTE: AdamW / miner-object construction in __init__ is training-only
        # machinery and does not affect the forward pass.

    def forward(self, query_toks1, query_toks2, labels):
        x1 = query_toks1["inputs_embeds"]
        x2 = query_toks2["inputs_embeds"]
        N, L, Din = x1.shape

        if self.agg_mode == "cls":
            # stand-in encoder is per-token: encode only the CLS token and fuse
            # both query batches into one encoder call; L2 norm fused into the
            # encoder epilogue when the output block spans the full H.
            x = jnp.concatenate([x1[:, 0], x2[:, 0]], axis=0)        # (2N, Din)
            emb, normalized = encode(x, self.enc_w_bf16, self.enc_b,
                                     normalize=True)
        else:
            x = jnp.concatenate([x1, x2], axis=0).reshape(2 * N * L, Din)
            h, _ = encode(x, self.enc_w_bf16, self.enc_b, normalize=False)
            h = h.reshape(2 * N, L, -1)
            if self.agg_mode == "mean_all_tok":
                emb = h.mean(axis=1)
            elif self.agg_mode == "mean":
                m = jnp.concatenate([query_toks1["attention_mask"],
                                     query_toks2["attention_mask"]],
                                    axis=0)[..., None].astype(h.dtype)
                emb = (h * m).sum(axis=1) / m.sum(axis=1)
            else:
                raise NotImplementedError(self.agg_mode)
            normalized = False
            # TODO(synk): token pooling stays in XLA; could be fused into the
            #             metric kernel with a token-axis BlockSpec.

        if not normalized:
            # tiny hoisted standalone normalization (single pass over (M, H))
            emb = emb * lax.rsqrt(
                jnp.maximum(jnp.sum(emb * emb, axis=-1, keepdims=True), 1e-24))

        labels2 = jnp.concatenate([labels, labels], axis=0)           # (2N,)
        return sap_metric_loss(emb, labels2)


# ----- main --------------------------------------------------------------------
if __name__ == "__main__":
    key = jax.random.PRNGKey(0)
    k1, k2, k3, k4 = jax.random.split(key, 4)

    # small synthetic shapes; Din/H lane-aligned (multiples of 128)
    N, L, Din, H = 8, 8, 256, 128
    x1 = jax.random.normal(k1, (N, L, Din), jnp.float32)
    x2 = x1 + 0.05 * jax.random.normal(k2, (N, L, Din), jnp.float32)
    attn_mask = jnp.ones((N, L), jnp.float32)
    labels = jnp.arange(N, dtype=jnp.int32) % 4    # 4 classes -> pos & neg pairs

    enc_w = jax.random.normal(k3, (Din, H), jnp.float32) / jnp.sqrt(Din)
    enc_b = 0.01 * jax.random.normal(k4, (H,), jnp.float32)

    model = SapMetricLearningPallas(enc_w, enc_b, agg_mode="cls")
    loss = model.forward(
        {"inputs_embeds": x1, "attention_mask": attn_mask},
        {"inputs_embeds": x2, "attention_mask": attn_mask},
        labels,
    )
    loss = jax.block_until_ready(loss)
    assert jnp.isfinite(loss)
    print("KERNEL_OK")
</pallas_src>

<mosaic_0001>
module attributes {stable_mosaic.version = 11 : i64} {
  func.func @encoder_kernel(%arg0: i32, %arg1: i32, %arg2: i32, %arg3: memref<16x256xf32, #tpu.memory_space<vmem>>, %arg4: memref<256x128xbf16, #tpu.memory_space<vmem>>, %arg5: memref<1x128xf32, #tpu.memory_space<vmem>>, %arg6: memref<16x128xf32, #tpu.memory_space<vmem>>, %arg7: memref<16x128xf32, #tpu.memory_space<vmem>>) attributes {dimension_semantics = [#tpu.dimension_semantics<parallel>, #tpu.dimension_semantics<parallel>, #tpu.dimension_semantics<arbitrary>], iteration_bounds = array<i64: 1, 1, 1>, scalar_prefetch = 0 : i64, scratch_operands = 1 : i64, tpu.core_type = #tpu.core_type<tc>, window_params = [{transform_indices = @transform_0, window_bounds = array<i64: 16, 256>}, {transform_indices = @transform_1, window_bounds = array<i64: 256, 128>}, {transform_indices = @transform_2, window_bounds = array<i64: 1, 128>}, {transform_indices = @transform_3, window_bounds = array<i64: 16, 128>}]} {
    %c0_i32 = arith.constant 0 : i32
    %0 = arith.cmpi eq, %arg2, %c0_i32 : i32
    %1 = arith.extui %0 : i1 to i32
    %c0_i32_0 = arith.constant 0 : i32
    %2 = arith.cmpi ne, %1, %c0_i32_0 : i32
    scf.if %2 {
      %cst_10 = arith.constant 0.000000e+00 : f32
      %13 = vector.broadcast %cst_10 : f32 to vector<16x128xf32>
      %c0_11 = arith.constant 0 : index
      %c0_12 = arith.constant 0 : index
      %14 = vector.load %arg7[%c0_11, %c0_12] : memref<16x128xf32, #tpu.memory_space<vmem>>, vector<16x128xf32>
      tpu.vector_store %arg7[%c0_11, %c0_12], %13 {strides = array<i32>} : memref<16x128xf32, #tpu.memory_space<vmem>>, vector<16x128xf32>,
    } else {
    }
    %c0 = arith.constant 0 : index
    %c0_1 = arith.constant 0 : index
    %3 = vector.load %arg7[%c0, %c0_1] : memref<16x128xf32, #tpu.memory_space<vmem>>, vector<16x128xf32>
    %c0_2 = arith.constant 0 : index
    %c0_3 = arith.constant 0 : index
    %4 = vector.load %arg3[%c0_2, %c0_3] : memref<16x256xf32, #tpu.memory_space<vmem>>, vector<16x256xf32>
    %5 = arith.truncf %4 : vector<16x256xf32> to vector<16x256xbf16>
    %c0_4 = arith.constant 0 : index
    %c0_5 = arith.constant 0 : index
    %6 = vector.load %arg4[%c0_4, %c0_5] : memref<256x128xbf16, #tpu.memory_space<vmem>>, vector<256x128xbf16>
    %cst = arith.constant dense<0.000000e+00> : vector<16x128xf32>
    %7 = tpu.matmul %5, %6, %cst {dimension_numbers = #tpu.dot_dimension_numbers<[1], [0], [0], [1], [0, 0, 1, 1], [], []>} : vector<16x256xbf16>, vector<256x128xbf16>, vector<16x128xf32> -> vector<16x128xf32>
    %8 = arith.addf %3, %7 : vector<16x128xf32>
    %c0_6 = arith.constant 0 : index
    %c0_7 = arith.constant 0 : index
    %9 = vector.load %arg7[%c0_6, %c0_7] : memref<16x128xf32, #tpu.memory_space<vmem>>, vector<16x128xf32>
    tpu.vector_store %arg7[%c0_6, %c0_7], %8 {strides = array<i32>} : memref<16x128xf32, #tpu.memory_space<vmem>>, vector<16x128xf32>,
    %c0_i32_8 = arith.constant 0 : i32
    %10 = arith.cmpi eq, %arg2, %c0_i32_8 : i32
    %11 = arith.extui %10 : i1 to i32
    %c0_i32_9 = arith.constant 0 : i32
    %12 = arith.cmpi ne, %11, %c0_i32_9 : i32
    scf.if %12 {
      %c0_10 = arith.constant 0 : index
      %c0_11 = arith.constant 0 : index
      %13 = vector.load %arg7[%c0_10, %c0_11] : memref<16x128xf32, #tpu.memory_space<vmem>>, vector<16x128xf32>
      %c0_12 = arith.constant 0 : index
      %c0_13 = arith.constant 0 : index
      %14 = vector.load %arg5[%c0_12, %c0_13] : memref<1x128xf32, #tpu.memory_space<vmem>>, vector<1x128xf32>
      %15 = vector.broadcast %14 : vector<1x128xf32> to vector<16x128xf32>
      %16 = arith.addf %13, %15 : vector<16x128xf32>
      %17 = math.tanh %16 : vector<16x128xf32>
      %18 = arith.mulf %17, %17 : vector<16x128xf32>
      %cst_14 = arith.constant dense<0.000000e+00> : vector<16xf32>
      %19 = vector.multi_reduction <add>, %18, %cst_14 [1] : vector<16x128xf32> to vector<16xf32>
      %20 = vector.shape_cast %19 : vector<16xf32> to vector<16x1xf32>
      %cst_15 = arith.constant 1.000000e-24 : f32
      %21 = vector.broadcast %cst_15 : f32 to vector<16x1xf32>
      %22 = arith.maximumf %20, %21 : vector<16x1xf32>
      %23 = math.rsqrt %22 : vector<16x1xf32>
      %24 = vector.broadcast %23 : vector<16x1xf32> to vector<16x128xf32>
      %25 = arith.mulf %17, %24 : vector<16x128xf32>
      %c0_16 = arith.constant 0 : index
      %c0_17 = arith.constant 0 : index
      %26 = vector.load %arg6[%c0_16, %c0_17] : memref<16x128xf32, #tpu.memory_space<vmem>>, vector<16x128xf32>
      tpu.vector_store %arg6[%c0_16, %c0_17], %25 {strides = array<i32>} : memref<16x128xf32, #tpu.memory_space<vmem>>, vector<16x128xf32>,
    } else {
    }
    return
  }
  func.func @transform_0(%arg0: i32, %arg1: i32, %arg2: i32) -> (i32, i32) {
    %c0_i32 = arith.constant 0 : i32
    return %arg0, %arg2 : i32, i32
  }
  func.func @transform_1(%arg0: i32, %arg1: i32, %arg2: i32) -> (i32, i32) {
    %c0_i32 = arith.constant 0 : i32
    return %arg2, %arg1 : i32, i32
  }
  func.func @transform_2(%arg0: i32, %arg1: i32, %arg2: i32) -> (i32, i32) {
    %c0_i32 = arith.constant 0 : i32
    %c0_i32_0 = arith.constant 0 : i32
    return %c0_i32, %arg1 : i32, i32
  }
  func.func @transform_3(%arg0: i32, %arg1: i32, %arg2: i32) -> (i32, i32) {
    %c0_i32 = arith.constant 0 : i32
    return %arg0, %arg1 : i32, i32
  }
}

</mosaic_0001>

<bundles_post_ra>
// kernel: tpu_custom_call.1
= control target key start
LH: loop header
LB: loop body
LE: loop exit
PB: predicated region body
PF: predicated region fallthrough
CT: control target
= control target key end

     0   :  { %8 = vsyncpa [#allocation4], 0  ;;  %s503_s0 = inlined_call_operand.hbm [shape: f32[16,256], index: 0, kind: input, shape index: {}]   ;;  %s504_s1 = inlined_call_operand.hbm [shape: bf16[256,128], index: 1, kind: input, shape index: {}]   ;;  %s505_s2 = inlined_call_operand.vmem [shape: f32[1,128], index: 2, kind: input, shape index: {}]   ;;  %s506_s3 = inlined_call_operand.hbm [shape: f32[16,128], index: 3, kind: output, shape index: {}]  }
   0x1   :  { %9 = vsyncpa [#allocation7], 0 }
   0x2   :  { %10 = vsyncpa [#allocation5], 0  ;;  %s15_s14 = sshll.u32 %s503_s0, 4  ;;  %s462_s15 = smov [#allocation3]   ;;  %s16_s14 = int_to_ptr.hbm [resolvable:$true] %s15_s14 }
   0x3   :  { %s17_s16 = sshll.u32 %s462_s15, 4  ;;  %s28_s19 = sshll.u32 %s504_s1, 4  ;;  %s18_s16 = int_to_ptr.vmem [resolvable:$true] %s17_s16  ;;  %s29_s19 = int_to_ptr.hbm [resolvable:$true] %s28_s19 }
   0x4   :  { %s463_s20 = smov 256   ;;  %s464_s21 = smov 16  }
   0x5   :  { %23 = dma.hbm_to_vmem [thread:$0]  %s16_s14, 512, %s18_s16, [#allocation4], %s463_s20, %s463_s20, %s464_s21  }
   0x6   :  { %s465_s22 = smov [#allocation6]   ;;  %s466_s24 = smov 64  }
   0x7   :  { %s30_s23 = sshll.u32 %s465_s22, 4  ;;  %s467_s25 = smov 4   ;;  %s31_s23 = int_to_ptr.vmem [resolvable:$true] %s30_s23 }
   0x8   :  { %36 = dma.hbm_to_vmem [thread:$0]  %s29_s19, 2048, %s31_s23, [#allocation7], %s466_s24, %s466_s24, %s467_s25  }
   0x9   :  { %456 = dma.done.wait [#allocation4], 512  }
   0xa   :  { %457 = vsyncadd [#allocation4], 4294966784 }
   0xb   :  { %458 = dma.done.wait [#allocation7], 2048  }
   0xc   :  { %459 = vsyncadd [#allocation7], 4294965248  ;;  %v357_v0 = vld [vmem:[#allocation6 + $0x38] sm:$0xff]  ;;  %v356_v2 = vld [vmem:[#allocation6 + $0x30] sm:$0xff]  ;;  %s272_s29 = sshll.u32 %s506_s3, 4  ;;  %s469_s30 = smov 128   ;;  %s273_s29 = int_to_ptr.hbm [resolvable:$true] %s272_s29 }
   0xd   :  { %v365_v1 = vld [vmem:[#allocation6 + $0x78] sm:$0xff]  ;;  %189 = vmatpush.bf16.msra.mxu0 %v357_v0  ;;  %v364_v3 = vld [vmem:[#allocation6 + $0x70] sm:$0xff]  ;;  %v355_v4 = vld [vmem:[#allocation6 + $0x28] sm:$0xff]  ;;  %s470_s4 = smov 8  }
   0xe   :  { %203 = vmatpush.bf16.msra.mxu1 %v365_v1  ;;  %v363_v5 = vld [vmem:[#allocation6 + $0x68] sm:$0xff]  ;;  %v354_v6 = vld [vmem:[#allocation6 + $0x20] sm:$0xff]  ;;  %v353_v8 = vld [vmem:[#allocation6 + $0x18] sm:$0xff] }
   0xf   :  { %v362_v7 = vld [vmem:[#allocation6 + $0x60] sm:$0xff]  ;;  %v361_v9 = vld [vmem:[#allocation6 + $0x58] sm:$0xff]  ;;  %v352_v10 = vld [vmem:[#allocation6 + $0x10] sm:$0xff] }
  0x10   :  { %v360_v11 = vld [vmem:[#allocation6 + $0x50] sm:$0xff]  ;;  %v351_v12 = vld [vmem:[#allocation6 + $0x8] sm:$0xff]  ;;  %v350_v14 = vld [vmem:[#allocation6] sm:$0xff] }
  0x11   :  { %190 = vmatpush.bf16.msra.mxu0 %v356_v2  ;;  %v359_v13 = vld [vmem:[#allocation6 + $0x48] sm:$0xff]  ;;  %v358_v15 = vld [vmem:[#allocation6 + $0x40] sm:$0xff]  ;;  %v57_v17 = vld [vmem:[#allocation3 + $0x10] sm:$0xff] }
  0x12   :  { %204 = vmatpush.bf16.msra.mxu1 %v364_v3  ;;  %v55_v16 = vld [vmem:[#allocation3] sm:$0xff]  ;;  %v56_v18 = vld [vmem:[#allocation3 + $0x8] sm:$0xff]  ;;  %v58_v19 = vld [vmem:[#allocation3 + $0x18] sm:$0xff] }
  0x13   :  { %v59_v20 = vpack.c.bf16 %v57_v17, %v55_v16  ;;  %v60_v21 = vpack.c.bf16 %v58_v19, %v56_v18  ;;  %v375_v22 = vld [vmem:[%s505_s2] ss:$0 sm:$0xff]  ;;  %s468_s2 = smov [#allocation8]  }
  0x14   :  { %s270_s26 = sshll.u32 %s468_s2, 4  ;;  %s271_s26 = int_to_ptr.vmem [resolvable:$true] %s270_s26 }
  0x15   :  { %191 = vmatpush.bf16.msra.mxu0 %v355_v4 }
  0x16   :  { %205 = vmatpush.bf16.msra.mxu1 %v363_v5 }
  0x19   :  { %192 = vmatpush.bf16.msra.mxu0 %v354_v6 }
  0x1a   :  { %206 = vmatpush.bf16.msra.mxu1 %v362_v7 }
  0x1d   :  { %193 = vmatpush.bf16.msra.mxu0 %v353_v8 }
  0x1e   :  { %207 = vmatpush.bf16.msra.mxu1 %v361_v9 }
  0x21   :  { %194 = vmatpush.bf16.msra.mxu0 %v352_v10 }
  0x22   :  { %208 = vmatpush.bf16.msra.mxu1 %v360_v11 }
  0x25   :  { %195 = vmatpush.bf16.msra.mxu0 %v351_v12 }
  0x26   :  { %209 = vmatpush.bf16.msra.mxu1 %v359_v13 }
  0x29   :  { %196 = vmatpush.bf16.msra.mxu0 %v350_v14 }
  0x2a   :  { %210 = vmatpush.bf16.msra.mxu1 %v358_v15 }
  0x2c   :  { %197 = vmatmul.bf16.vlgmr.msra.gmra.mxu0 %v59_v20 }
  0x2d   :  { %211 = vmatmul.bf16.vlgmr.msra.gmra.mxu1 %v60_v21 }
  0xa9   :  { %v198_v23 = vpop.f32.mrf.mxu0 }
  0xaa   :  { %v212_v24 = vpop.f32.mrf.mxu1 }
  0xab   :  { %v213_v25 = vadd.f32 %v212_v24, %v198_v23 }
  0xad   :  { %v230_v26 = vadd.f32 %v375_v22, %v213_v25 }
  0xaf   :  { %376 = vtanh.f32 %v230_v26 }
  0xb1   :  { %v200_v27 = vpop.f32.mrf.mxu0 }
  0xb2   :  { %v214_v28 = vpop.f32.mrf.mxu1 }
  0xb3   :  { %v215_v29 = vadd.f32 %v214_v28, %v200_v27 }
  0xb5   :  { %v377_v30 = vpop.eup %376  ;;  %v231_v31 = vadd.f32 %v375_v22, %v215_v29 }
  0xb6   :  { %v234_v32 = vmul.f32 %v377_v30, %v377_v30 }
  0xb7   :  { %378 = vtanh.f32 %v231_v31 }
  0xb8   :  { %236 = vadd.xlane.f32.xlu0 %v234_v32 }
  0xbd   :  { %v379_v33 = vpop.eup %378 }
  0xbe   :  { %v235_v34 = vmul.f32 %v379_v33, %v379_v33 }
  0xc0   :  { %238 = vadd.xlane.f32.xlu0 %v235_v34 }
 0x12b   :  { %v237_v35 = vpop.xlane.xlu0 %236 }
 0x12c   :  { %v240_v36 = vmax.f32 %v237_v35, 1e-24 }
 0x12e   :  { %380 = vrsqrt.f32 %v240_v36  ;;  %vm248_vm1 = vweird.f32 %v240_v36 }
 0x133   :  { %v239_v37 = vpop.xlane.xlu0 %238 }
 0x134   :  { %v381_v38 = vpop.eup %380  ;;  %v241_v39 = vmax.f32 %v239_v37, 1e-24 }
 0x135   :  { %v243_v40 = vmul.f32 %v381_v38, %v240_v36  ;;  %vm249_vm0 = vweird.f32 %v381_v38 }
 0x136   :  { %382 = vrsqrt.f32 %v241_v39  ;;  %vm250_vm2 = vmor %vm248_vm1, %vm249_vm0  ;;  %vm258_vm4 = vweird.f32 %v241_v39 }
 0x137   :  { %v244_v41 = vmul.f32 %v381_v38, %v243_v40 }
 0x139   :  { %v245_v42 = vmul.f32 0.5, %v244_v41 }
 0x13b   :  { %v246_v43 = vsub.f32 1.5, %v245_v42 }
 0x13c   :  { %v383_v44 = vpop.eup %382 }
 0x13d   :  { %v247_v45 = vmul.f32 %v381_v38, %v246_v43  ;;  %v253_v46 = vmul.f32 %v383_v44, %v241_v39  ;;  %vm259_vm3 = vweird.f32 %v383_v44 }
 0x13e   :  { %vm260_vm5 = vmor %vm258_vm4, %vm259_vm3 }
 0x13f   :  { %v251_v47 = vsel %vm250_vm2, %v381_v38, %v247_v45  ;;  %v254_v48 = vmul.f32 %v383_v44, %v253_v46 }
 0x140   :  { %v262_v49 = vmul.f32 %v377_v30, %v251_v47 }
 0x141   :  { %v255_v50 = vmul.f32 0.5, %v254_v48 }
 0x142   :  { %264 = vst [vmem:[#allocation8] sm:$0xff] %v262_v49 }
 0x143   :  { %v256_v51 = vsub.f32 1.5, %v255_v50 }
 0x145   :  { %v257_v52 = vmul.f32 %v383_v44, %v256_v51 }
 0x147   :  { %v261_v53 = vsel %vm260_vm5, %v383_v44, %v257_v52 }
 0x148   :  { %v263_v54 = vmul.f32 %v379_v33, %v261_v53 }
 0x14a   :  { %265 = vst [vmem:[#allocation8 + $0x8] sm:$0xff] %v263_v54 }
 0x14b   :  { %278 = dma.vmem_to_hbm [thread:$0]  %s271_s26, 256, %s273_s29, [#allocation5], %s469_s30, %s469_s30, %s470_s4  }
 0x14c   :  { %460 = dma.done.wait [#allocation5], 256  }
 0x14d   :  { %461 = vsyncadd [#allocation5], 4294967040 }
 0x14e   :  { %283 = vsyncpa [#allocation4], 1 }
 0x14f   :  { %284 = vsyncpa [#allocation7], 1 }
 0x150   :  { %285 = vsyncpa [#allocation5], 1 }

</bundles_post_ra>
